<compile_context>
chip_gen: v7x
topology: tpu7x:2x2x1
jax: 0.10.0
libtpu: 0.0.40
codegen_flags: <defaults>
</compile_context>

<pallas_src>
import functools

import jax
import jax.numpy as jnp
from jax import lax
from jax.experimental import pallas as pl
from jax.experimental.pallas import tpu as pltpu

_MIB = 1024 * 1024


# ----------------------------------------------------------------------------
# helpers
# ----------------------------------------------------------------------------
def _vmem_capacity_bytes():
    try:
        return int(pltpu.get_tpu_info().vmem_capacity_bytes)
    except Exception:
        return 64 * _MIB  # conservative (v7x-sized) fallback


def _pick_row_tile(n, row_bytes, budget_bytes):
    """Largest 8-multiple row tile dividing n whose double-buffered slab fits."""
    candidates = [t for t in (1024, 512, 256, 128, 64, 32, 16, 8) if n % t == 0]
    if not candidates:
        return None
    for t in candidates:
        if 2 * t * row_bytes <= budget_bytes:
            return t
    return candidates[-1]


# ----------------------------------------------------------------------------
# forward(): EstimateAdj.forward() just returns the parameter.
# Making it a copy kernel would be 2*N^2 bytes of pure HBM traffic, so per the
# perf review it is a true no-op.
# ----------------------------------------------------------------------------
def adj_renew_forward(estimated_adj):
    return estimated_adj


# ----------------------------------------------------------------------------
# Resident fast path: A fits VMEM -> single fused kernel, A read from HBM once.
# ----------------------------------------------------------------------------
def _fused_kernel(adj_ref, x_ref, loss_ref, *, mxu_dtype):
    a = adj_ref[...].astype(jnp.float32)                          # [N, N]
    # rs = rowsum((A + A^T)/2) = 0.5*(A.sum(1) + A.sum(0)) directly in [N, 1]
    # layout (column sums via one MXU contraction against ones; no N x N
    # transpose is ever materialized).  One-shot, so the skinny dot is fine.
    row = jnp.sum(a, axis=1, keepdims=True)                       # [N, 1]
    ones = jnp.ones((a.shape[0], 1), dtype=jnp.float32)
    col = lax.dot_general(a, ones, (((0,), (0,)), ((), ())),
                          preferred_element_type=jnp.float32)     # [N, 1]
    rs = 0.5 * (row + col)
    r_inv = lax.rsqrt(rs + 0.001)                                 # EUP
    r_inv = jnp.where(jnp.isinf(r_inv), 0.0, r_inv)               # torch parity
    xs = r_inv * x_ref[...].astype(jnp.float32)                   # diag(rinv)@X
    # trace(Xs^T L' Xs) = sum_i rs_i*||Xs_i||^2 - trace(Xs^T A Xs)
    ax = jnp.dot(a.astype(mxu_dtype), xs.astype(mxu_dtype),
                 preferred_element_type=jnp.float32)              # [N, F]
    loss_ref[...] = jnp.sum(rs * xs * xs - xs * ax, keepdims=True)


def _feature_smoothing_resident(adj, x, mxu_dtype, cap, need):
    n, f = adj.shape[0], x.shape[1]
    limit = int(min(cap - 4 * _MIB, max(need + 4 * _MIB, 32 * _MIB)))
    out = pl.pallas_call(
        functools.partial(_fused_kernel, mxu_dtype=mxu_dtype),
        out_shape=jax.ShapeDtypeStruct((1, 1), jnp.float32),
        grid=(1,),
        in_specs=[pl.BlockSpec((n, n), lambda i: (0, 0)),
                  pl.BlockSpec((n, f), lambda i: (0, 0))],
        out_specs=pl.BlockSpec((1, 1), lambda i: (0, 0)),
        compiler_params=pltpu.CompilerParams(
            dimension_semantics=("arbitrary",),
            vmem_limit_bytes=limit),
    )(adj, x)
    return out[0, 0]


# ----------------------------------------------------------------------------
# Streamed path (large N): two parallel-grid kernels + O(N*F) glue.
# ----------------------------------------------------------------------------
def _sums_kernel(adj_ref, row_ref, colp_ref):
    slab = adj_ref[...].astype(jnp.float32)                       # [tm, N]
    # Per-tile row sums: tiny (tm, 1) assignment (no cross-tile RMW).
    row_ref[...] = jnp.sum(slab, axis=1, keepdims=True)
    # Lane-dense column-sum partial: one sublane reduce to [1, N], replicated
    # over 8 sublanes so the output block stays (8, N)-tileable; the wrapper
    # divides the cross-tile sum by 8.
    colsum = jnp.sum(slab, axis=0, keepdims=True)                 # [1, N]
    colp_ref[...] = jnp.broadcast_to(colsum, (8, slab.shape[1]))


def _quad_kernel(adj_ref, xs_ref, part_ref, *, tm, mxu_dtype):
    i = pl.program_id(0)
    f = xs_ref.shape[1]
    # A_tile @ Xs on the MXU; the slab is cast once, straight to the MXU dtype
    # (no f32 round-trip); Xs was cast to mxu_dtype once, in the wrapper.
    ax = jnp.dot(adj_ref[...].astype(mxu_dtype), xs_ref[...],
                 preferred_element_type=jnp.float32)              # [tm, F]
    start = pl.multiple_of(i * tm, tm)
    xs_tile = xs_ref[pl.ds(start, tm), :].astype(jnp.float32)     # [tm, F]
    # Lane-dense per-tile partial (sublane reduce only); the single cross-lane
    # reduce happens once, outside the grid.
    psum = jnp.sum(xs_tile * ax, axis=0, keepdims=True)           # [1, F]
    part_ref[...] = jnp.broadcast_to(psum, (8, f))


def _feature_smoothing_streamed(adj, x, tm, mxu_dtype, cap):
    n, f = adj.shape[0], x.shape[1]
    assert n % tm == 0
    num_tiles = n // tm
    adj_isz = jnp.dtype(adj.dtype).itemsize
    mxu_isz = jnp.dtype(mxu_dtype).itemsize

    need = 2 * tm * n * adj_isz + 2 * n * f * mxu_isz + 2 * _MIB
    limit = int(min(cap - 4 * _MIB, max(need + 4 * _MIB, 32 * _MIB)))
    # NOTE: if profiling shows exposed DMA on the adj slab, pl.Buffered(3) on
    # the adj in_spec is an option on v5e/v6e (128 MiB VMEM), not v7x.
    params = pltpu.CompilerParams(dimension_semantics=("parallel",),
                                  vmem_limit_bytes=limit)

    # Pass 1: row sums + lane-dense column-sum partials (A streamed once).
    row_out, colp_out = pl.pallas_call(
        _sums_kernel,
        out_shape=(jax.ShapeDtypeStruct((n, 1), jnp.float32),
                   jax.ShapeDtypeStruct((8 * num_tiles, n), jnp.float32)),
        grid=(num_tiles,),
        in_specs=[pl.BlockSpec((tm, n), lambda i: (i, 0))],
        out_specs=(pl.BlockSpec((tm, 1), lambda i: (i, 0)),
                   pl.BlockSpec((8, n), lambda i: (i, 0))),
        compiler_params=params,
    )(adj)

    # O(N) / O(N*F) glue: scaling, diag(rinv) @ X, and the D-term of the trace.
    rs = 0.5 * (row_out[:, 0] + colp_out.sum(axis=0) / 8.0)       # [N]
    r_inv = lax.rsqrt(rs + 0.001)
    r_inv = jnp.where(jnp.isinf(r_inv), 0.0, r_inv)
    xs = r_inv[:, None] * x.astype(jnp.float32)                   # [N, F]
    term1 = jnp.sum(rs[:, None] * xs * xs)

    # Pass 2: quadratic form trace(Xs^T A Xs) (second, unavoidable read of A).
    parts = pl.pallas_call(
        functools.partial(_quad_kernel, tm=tm, mxu_dtype=mxu_dtype),
        out_shape=jax.ShapeDtypeStruct((8 * num_tiles, f), jnp.float32),
        grid=(num_tiles,),
        in_specs=[pl.BlockSpec((tm, n), lambda i: (i, 0)),
                  pl.BlockSpec((n, f), lambda i: (0, 0))],        # Xs resident
        out_specs=pl.BlockSpec((8, f), lambda i: (i, 0)),
        compiler_params=params,
    )(adj, xs.astype(mxu_dtype))

    return term1 - jnp.sum(parts) / 8.0


# ----------------------------------------------------------------------------
# feature_smoothing(adj, X): loss = trace(X^T L X), L scaled Laplacian of
# (A + A^T)/2.
# ----------------------------------------------------------------------------
def feature_smoothing(adj, x, *, row_tile=None, mxu_dtype=jnp.bfloat16):
    n = adj.shape[0]
    f = x.shape[1]
    assert adj.shape == (n, n) and x.shape[0] == n

    cap = _vmem_capacity_bytes()
    adj_isz = jnp.dtype(adj.dtype).itemsize
    mxu_isz = jnp.dtype(mxu_dtype).itemsize

    # Conservative resident-path footprint: double-buffered A + f32/bf16
    # working copies + X/Xs temporaries.
    resident_need = 3 * n * n * 4 + 8 * n * f * 4 + 4 * _MIB

    if row_tile is None:
        if resident_need <= int(0.7 * cap):
            return _feature_smoothing_resident(adj, x, mxu_dtype, cap,
                                               resident_need)
        xs_bytes = n * f * mxu_isz
        tm = _pick_row_tile(n, n * adj_isz,
                            max(4 * _MIB, int(0.5 * cap) - 2 * xs_bytes))
        if tm is None:
            # TODO(synk): pad/mask ragged N (no 8-multiple divisor); fall back
            # to the resident path rather than reading OOB VMEM scratch.
            return _feature_smoothing_resident(adj, x, mxu_dtype, cap,
                                               resident_need)
    else:
        tm = int(row_tile)
        if tm != n and (tm % 8 != 0 or n % tm != 0):
            raise ValueError("row_tile must divide N and be a multiple of 8")
    return _feature_smoothing_streamed(adj, x, tm, mxu_dtype, cap)


# ----------------------------------------------------------------------------
# Pure-JAX reference (mirrors the torch code) for verification.
# ----------------------------------------------------------------------------
def _feature_smoothing_ref(adj, x):
    adj = (adj.T + adj) / 2.0
    rowsum = adj.sum(1)
    d_mat = jnp.diag(rowsum)
    lap = d_mat - adj
    r_inv = (rowsum + 0.001) ** (-0.5)
    r_inv = jnp.where(jnp.isinf(r_inv), 0.0, r_inv)
    r_mat_inv = jnp.diag(r_inv)
    lap = r_mat_inv @ lap @ r_mat_inv
    return jnp.trace(x.T @ lap @ x)


if __name__ == "__main__":
    key = jax.random.PRNGKey(0)
    node_num = 16   # N
    nfeat = 32      # F

    k_adj, k_x, k_adj2, k_x2 = jax.random.split(key, 4)

    # Deterministic synthetic adjacency (dense, symmetric, 0/1) and features.
    raw = (jax.random.uniform(k_adj, (node_num, node_num)) < 0.3).astype(jnp.float32)
    adj = jnp.maximum(raw, raw.T)
    features = jax.random.normal(k_x, (node_num, nfeat), dtype=jnp.float32)

    # EstimateAdj._init_estimation: estimated_adj parameter <- dense adj.
    estimated_adj = adj

    # forward(): returns the estimated_adj parameter (no-op, no HBM copy).
    out = adj_renew_forward(estimated_adj)
    jax.block_until_ready(out)
    assert out.shape == (node_num, node_num)
    assert bool(jnp.allclose(out, estimated_adj))

    loss_ref = _feature_smoothing_ref(estimated_adj, features)

    # Resident fused path, f32 MXU (tight tolerance).
    loss_f32 = feature_smoothing(estimated_adj, features, mxu_dtype=jnp.float32)
    jax.block_until_ready(loss_f32)
    assert bool(jnp.allclose(loss_f32, loss_ref, rtol=1e-3, atol=1e-2)), (
        loss_f32, loss_ref)

    # Resident fused path, default bf16 MXU (looser tolerance).
    loss_bf16 = feature_smoothing(estimated_adj, features)
    jax.block_until_ready(loss_bf16)
    assert bool(jnp.allclose(loss_bf16, loss_ref, rtol=3e-2, atol=1.0)), (
        loss_bf16, loss_ref)

    # Streamed (tiled, parallel-grid) path with a non-symmetric adjacency.
    n2, f2, tile2 = 64, 8, 8
    adj2 = jax.random.uniform(k_adj2, (n2, n2), dtype=jnp.float32)
    x2 = jax.random.normal(k_x2, (n2, f2), dtype=jnp.float32)
    loss2_ref = _feature_smoothing_ref(adj2, x2)

    loss2_f32 = feature_smoothing(adj2, x2, row_tile=tile2, mxu_dtype=jnp.float32)
    jax.block_until_ready(loss2_f32)
    assert bool(jnp.allclose(loss2_f32, loss2_ref, rtol=1e-3, atol=1e-2)), (
        loss2_f32, loss2_ref)

    loss2_bf16 = feature_smoothing(adj2, x2, row_tile=tile2)
    jax.block_until_ready(loss2_bf16)
    assert bool(jnp.allclose(loss2_bf16, loss2_ref, rtol=3e-2, atol=1.0)), (
        loss2_bf16, loss2_ref)

    # TODO(synk): fit()/train_adj() involve SGD/PGD proximal optimizers
    # (training-loop state), which are out of scope for a forward kernel.

    print("KERNEL_OK")
</pallas_src>

<mosaic_0001>
module attributes {stable_mosaic.version = 11 : i64} {
  func.func @_fused_kernel(%arg0: i32, %arg1: memref<16x16xf32, #tpu.memory_space<vmem>>, %arg2: memref<16x32xf32, #tpu.memory_space<vmem>>, %arg3: memref<1x1xf32, #tpu.memory_space<vmem>>) attributes {dimension_semantics = [#tpu.dimension_semantics<arbitrary>], iteration_bounds = array<i64: 1>, scalar_prefetch = 0 : i64, scratch_operands = 0 : i64, tpu.core_type = #tpu.core_type<tc>, window_params = [{pipeline_mode = #tpu.pipeline_mode<synchronous>, transform_indices = @transform_0, window_bounds = array<i64: 16, 16>}, {pipeline_mode = #tpu.pipeline_mode<synchronous>, transform_indices = @transform_1, window_bounds = array<i64: 16, 32>}, {pipeline_mode = #tpu.pipeline_mode<synchronous>, transform_indices = @transform_2, window_bounds = array<i64: 1, 1>}]} {
    %c0 = arith.constant 0 : index
    %c0_0 = arith.constant 0 : index
    %0 = vector.load %arg1[%c0, %c0_0] : memref<16x16xf32, #tpu.memory_space<vmem>>, vector<16x16xf32>
    %cst = arith.constant dense<0.000000e+00> : vector<16xf32>
    %1 = vector.multi_reduction <add>, %0, %cst [1] : vector<16x16xf32> to vector<16xf32>
    %2 = vector.shape_cast %1 : vector<16xf32> to vector<16x1xf32>
    %cst_1 = arith.constant 1.000000e+00 : f32
    %3 = vector.broadcast %cst_1 : f32 to vector<16x1xf32>
    %cst_2 = arith.constant dense<0.000000e+00> : vector<16x1xf32>
    %4 = tpu.matmul %0, %3, %cst_2 {dimension_numbers = #tpu.dot_dimension_numbers<[0], [0], [1], [1], [0, 1, 1, 1], [], []>} : vector<16x16xf32>, vector<16x1xf32>, vector<16x1xf32> -> vector<16x1xf32>
    %5 = arith.addf %2, %4 : vector<16x1xf32>
    %cst_3 = arith.constant 5.000000e-01 : f32
    %6 = vector.broadcast %cst_3 : f32 to vector<16x1xf32>
    %7 = arith.mulf %6, %5 : vector<16x1xf32>
    %cst_4 = arith.constant 1.000000e-03 : f32
    %8 = vector.broadcast %cst_4 : f32 to vector<16x1xf32>
    %9 = arith.addf %7, %8 : vector<16x1xf32>
    %10 = math.rsqrt %9 : vector<16x1xf32>
    %11 = math.absf %10 : vector<16x1xf32>
    %cst_5 = arith.constant 0x7F800000 : f32
    %12 = vector.broadcast %cst_5 : f32 to vector<16x1xf32>
    %13 = arith.cmpf oeq, %11, %12 : vector<16x1xf32>
    %cst_6 = arith.constant 0.000000e+00 : f32
    %14 = vector.broadcast %cst_6 : f32 to vector<16x1xf32>
    %15 = arith.select %13, %14, %10 : vector<16x1xi1>, vector<16x1xf32>
    %c0_7 = arith.constant 0 : index
    %c0_8 = arith.constant 0 : index
    %16 = vector.load %arg2[%c0_7, %c0_8] : memref<16x32xf32, #tpu.memory_space<vmem>>, vector<16x32xf32>
    %17 = vector.broadcast %15 : vector<16x1xf32> to vector<16x32xf32>
    %18 = arith.mulf %17, %16 : vector<16x32xf32>
    %cst_9 = arith.constant dense<0.000000e+00> : vector<16x32xf32>
    %19 = tpu.matmul %0, %18, %cst_9 {dimension_numbers = #tpu.dot_dimension_numbers<[1], [0], [0], [1], [0, 0, 1, 1], [], []>} : vector<16x16xf32>, vector<16x32xf32>, vector<16x32xf32> -> vector<16x32xf32>
    %20 = vector.broadcast %7 : vector<16x1xf32> to vector<16x32xf32>
    %21 = arith.mulf %20, %18 : vector<16x32xf32>
    %22 = arith.mulf %21, %18 : vector<16x32xf32>
    %23 = arith.mulf %18, %19 : vector<16x32xf32>
    %24 = arith.subf %22, %23 : vector<16x32xf32>
    %25 = vector.shape_cast %24 : vector<16x32xf32> to vector<1x16x32xf32>
    %cst_10 = arith.constant dense<0.000000e+00> : vector<1xf32>
    %26 = vector.multi_reduction <add>, %25, %cst_10 [1, 2] : vector<1x16x32xf32> to vector<1xf32>
    %27 = vector.shape_cast %26 : vector<1xf32> to vector<1x1x1xf32>
    %28 = vector.extract %27[0, 0, 0] : f32 from vector<1x1x1xf32>
    %29 = vector.broadcast %28 : f32 to vector<1x1xf32>
    %c0_11 = arith.constant 0 : index
    %c0_12 = arith.constant 0 : index
    %30 = vector.load %arg3[%c0_11, %c0_12] : memref<1x1xf32, #tpu.memory_space<vmem>>, vector<1x1xf32>
    tpu.vector_store %arg3[%c0_11, %c0_12], %29 {strides = array<i32>} : memref<1x1xf32, #tpu.memory_space<vmem>>, vector<1x1xf32>,
    return
  }
  func.func @transform_0(%arg0: i32) -> (i32, i32) {
    %c0_i32 = arith.constant 0 : i32
    %c0_i32_0 = arith.constant 0 : i32
    %c0_i32_1 = arith.constant 0 : i32
    return %c0_i32, %c0_i32_0 : i32, i32
  }
  func.func @transform_1(%arg0: i32) -> (i32, i32) {
    %c0_i32 = arith.constant 0 : i32
    %c0_i32_0 = arith.constant 0 : i32
    %c0_i32_1 = arith.constant 0 : i32
    return %c0_i32, %c0_i32_0 : i32, i32
  }
  func.func @transform_2(%arg0: i32) -> (i32, i32) {
    %c0_i32 = arith.constant 0 : i32
    %c0_i32_0 = arith.constant 0 : i32
    %c0_i32_1 = arith.constant 0 : i32
    return %c0_i32, %c0_i32_0 : i32, i32
  }
}

</mosaic_0001>

<bundles_post_ra>
// kernel: tpu_custom_call.1
= control target key start
LH: loop header
LB: loop body
LE: loop exit
PB: predicated region body
PF: predicated region fallthrough
CT: control target
= control target key end

     0   :  { %7 = vsyncpa [#allocation3], 0  ;;  %s505_s0 = inlined_call_operand.hbm [shape: f32[16,16], index: 0, kind: input, shape index: {}]   ;;  %s506_s1 = inlined_call_operand.hbm [shape: f32[16,32], index: 1, kind: input, shape index: {}]   ;;  %s507_s2 = inlined_call_operand.hbm [shape: f32[1,1], index: 2, kind: output, shape index: {}]  }
   0x1   :  { %8 = vsyncpa [#allocation6], 0 }
   0x2   :  { %9 = vsyncpa [#allocation4], 0  ;;  %s441_s9 = smov [#allocation2]   ;;  %s369_s13 = scalar_lea.hbm %s505_s0, 256 }
   0x3   :  { %s15_s10 = sshll.u32 %s441_s9, 4  ;;  %p370_p0 = scmp.ne.s32.totalorder %s505_s0, %s369_s13  ;;  %s16_s10 = int_to_ptr.vmem [resolvable:$true] %s15_s10 }
   0x4   :  { %p373_p1 = scmp.lt.u32.totalorder %s369_s13, %s505_s0 }
   0x6   :  { %p375_p2 = pnand %p373_p1, %p370_p0 }
   0x8   :  { %378 = shalt.err (!%p375_p2)
}
   0x9   :  { %s379_s18 = scalar_lea.vmem %s16_s10, 256  ;;  %p384_p4 = scmp.lt.s32.totalorder %s16_s10, %s16_s10 }
   0xa   :  { %p380_p3 = scmp.ne.s32.totalorder %s16_s10, %s379_s18  ;;  %p385_p5 = scmp.lt.s32.totalorder %s379_s18, %s379_s18 }
   0xc   :  { %p386_p6 = por %p385_p5, %p384_p4 }
   0xe   :  { %p387_p7 = pnand %p386_p6, %p380_p3 }
  0x10   :  { %390 = shalt.err (!%p387_p7)
}
  0x11   :  { %s442_s19 = smov 128   ;;  %s443_s20 = smov 8  }
  0x12   :  { %21 = dma.hbm_to_vmem [thread:$0]  %s505_s0, 256, %s16_s10, [#allocation3], %s442_s19, %s442_s19, %s443_s20  }
  0x13   :  { %s444_s23 = smov [#allocation5]   ;;  %s391_s27 = scalar_lea.hbm %s506_s1, 256 }
  0x14   :  { %s27_s24 = sshll.u32 %s444_s23, 4  ;;  %p392_p8 = scmp.ne.s32.totalorder %s506_s1, %s391_s27  ;;  %s28_s24 = int_to_ptr.vmem [resolvable:$true] %s27_s24 }
  0x15   :  { %p395_p9 = scmp.lt.u32.totalorder %s391_s27, %s506_s1 }
  0x17   :  { %p397_p10 = pnand %p395_p9, %p392_p8 }
  0x19   :  { %400 = shalt.err (!%p397_p10)
}
  0x1a   :  { %s401_s4 = scalar_lea.vmem %s28_s24, 256  ;;  %p406_p12 = scmp.lt.s32.totalorder %s28_s24, %s28_s24 }
  0x1b   :  { %p402_p11 = scmp.ne.s32.totalorder %s28_s24, %s401_s4  ;;  %p407_p13 = scmp.lt.s32.totalorder %s401_s4, %s401_s4 }
  0x1d   :  { %p408_p0 = por %p407_p13, %p406_p12 }
  0x1f   :  { %p409_p1 = pnand %p408_p0, %p402_p11 }
  0x21   :  { %412 = shalt.err (!%p409_p1)
}
  0x22   :  { %33 = dma.hbm_to_vmem [thread:$0]  %s506_s1, 256, %s28_s24, [#allocation6], %s442_s19, %s442_s19, %s443_s20  }
  0x23   :  { %435 = dma.done.wait [#allocation3], 256  }
  0x24   :  { %436 = vsyncadd [#allocation3], 4294967040 }
  0x25   :  { %437 = dma.done.wait [#allocation6], 256  }
  0x26   :  { %438 = vsyncadd [#allocation6], 4294967040  ;;  %v40_v0 = vld [vmem:[#allocation2] sm:$0xff]  ;;  %vm42_vm0 = vcmask 130048   ;;  %v41_v1 = vld [vmem:[#allocation2 + $0x8] sm:$0xff]  ;;  %v446_v7 = vmov 0  }
  0x27   :  { %49 = vxpose.xlu0.b32.start [1/2] (short) (narrow) %v40_v0, 16  ;;  %v445_v2 = vmov 1.0|1.0   ;;  %344 = vmatprep.mubr.msk.f32.mxu1 %vm42_vm0, %v40_v0  ;;  %v43_v3 = vsel %vm42_vm0, %v40_v0, 0.0  ;;  %v46_v4 = vsel %vm42_vm0, %v41_v1, 0.0  ;;  %v177_v24 = vld [vmem:[#allocation5 + $0x8] sm:$0xff] }
  0x28   :  { %347 = vmatprep.subr.bf16.mxu0 %v445_v2  ;;  %44 = vadd.xlane.f32.xlu1 %v43_v3  ;;  %v176_v25 = vld [vmem:[#allocation5] sm:$0xff]  ;;  %vm289_vm3 = vcmask 261120   ;;  %s447_s1 = smov [#allocation7]   ;;  %vm303_vm4 = vcmask 0  }
  0x29   :  { %348 = vmatpush3.bf16.msra.mxu0 %v445_v2  ;;  %364 = vset.pattern.permute.xlu1 %v446_v7  ;;  %s311_s6 = sshll.u32 %s447_s1, 4  ;;  %s312_s6 = int_to_ptr.vmem [resolvable:$true] %s311_s6 }
  0x2a   :  { %s413_s8 = scalar_lea.vmem %s312_s6, 16  ;;  %s417_s9 = scalar_lea.vmem %s312_s6, 32 }
  0x2b   :  { %50 = vxpose.xlu0.b32.end [2/2] (short) (narrow) %v41_v1, 16  ;;  %p414_p2 = scmp.ne.s32.totalorder %s312_s6, %s413_s8  ;;  %p418_p3 = scmp.lt.s32.totalorder %s312_s6, %s312_s6 }
  0x2c   :  { %47 = vadd.xlane.f32.xlu1 %v46_v4  ;;  %p419_p4 = scmp.lt.s32.totalorder %s417_s9, %s413_s8 }
  0x2e   :  { %p420_p5 = por %p419_p4, %p418_p3 }
  0x30   :  { %p421_p6 = pnand %p420_p5, %p414_p2 }
  0x54   :  { %363 = vset.pattern.permute.xlu0 %v446_v7 }
  0xa7   :  { %v65_v5 = vpop.trf.xlu0 }
  0xa8   :  { %337 = vmatprep.mubr.msk.f32.mxu0 %vm42_vm0, %v65_v5 }
  0xab   :  { %v66_v6 = vpop.trf.xlu0 }
  0xac   :  { %338 = vmatmul.mubr.msk.f32.vlgmr.msra.gmra.mrb[0].mxu0 %vm42_vm0, %v66_v6 }
  0xb5   :  { %v45_v8 = vpop.xlane.xlu1 %44 }
  0xb9   :  { %v48_v9 = vpop.xlane.xlu1 %47 }
 0x17f   :  { %v339_v10 = vpop.f32.mrb[0].mxu0 }
 0x180   :  { %v163_v11 = vadd.f32 %v339_v10, %v48_v9  ;;  %v153_v12 = vpop.f32.mrb[1].mxu0 }
 0x181   :  { %v162_v13 = vadd.f32 %v153_v12, %v45_v8 }
 0x182   :  { %v165_v14 = vmul.f32 0.5, %v163_v11 }
 0x183   :  { %v164_v15 = vmul.f32 0.5, %v162_v13 }
 0x184   :  { %v167_v16 = vadd.f32 0.001, %v165_v14 }
 0x185   :  { %v166_v17 = vadd.f32 0.001, %v164_v15 }
 0x186   :  { %365 = vrsqrt.f32 %v167_v16 }
 0x187   :  { %367 = vrsqrt.f32 %v166_v17 }
 0x190   :  { %v366_v18 = vpop.eup %365 }
 0x191   :  { %v368_v19 = vpop.eup %367  ;;  %v171_v20 = vand.u32 2147483647, %v366_v18 }
 0x192   :  { %v170_v21 = vand.u32 2147483647, %v368_v19 }
 0x193   :  { %vm173_vm1 = vcmp.eq.f32.partialorder %v171_v20, inf }
 0x194   :  { %v175_v22 = vsel %vm173_vm1, 0.0, %v366_v18  ;;  %vm172_vm2 = vcmp.eq.f32.partialorder %v170_v21, inf }
 0x195   :  { %185 = vperm.xlu1 %364, %v175_v22   ;;  %v174_v23 = vsel %vm172_vm2, 0.0, %v368_v19 }
 0x196   :  { %180 = vperm.xlu0 %363, %v174_v23  }
 0x199   :  { %273 = vperm.xlu1 %364, %v164_v15  }
 0x19d   :  { %278 = vperm.xlu1 %364, %v165_v14  }
 0x214   :  { %v186_v26 = vpop.permute.xlu1 %185 }
 0x215   :  { %v189_v27 = vmul.f32 %v186_v26, %v177_v24  ;;  %v181_v28 = vpop.permute.xlu0 %180 }
 0x216   :  { %v188_v29 = vmul.f32 %v181_v28, %v176_v25 }
 0x218   :  { %v349_v30 = vpack.c.bf16 %v189_v27, %v188_v29  ;;  %v274_v31 = vpop.permute.xlu1 %273 }
 0x219   :  { %v281_v34 = vmul.f32 %v274_v31, %v188_v29 }
 0x21a   :  { %350 = vmatprep.subr.bf16.mxu1 %v349_v30 }
 0x21b   :  { %352 = vmatpush3.bf16.msra.mxu1 %v349_v30  ;;  %v283_v39 = vmul.f32 %v281_v34, %v188_v29 }
 0x21c   :  { %v279_v32 = vpop.permute.xlu1 %278 }
 0x21d   :  { %v282_v33 = vmul.f32 %v279_v32, %v189_v27 }
 0x21e   :  { %345 = vmatmul.mubr.msk.f32.vlgmr.msra.gmra.mrb[0].mxu1 %vm42_vm0, %v41_v1 }
 0x21f   :  { %v284_v36 = vmul.f32 %v282_v33, %v189_v27 }
 0x2f1   :  { %v346_v35 = vpop.f32.mrb[0].mxu1 }
 0x2f2   :  { %v286_v37 = vmul.f32 %v346_v35, %v189_v27  ;;  %v262_v38 = vpop.f32.mrb[1].mxu1 }
 0x2f3   :  { %v285_v40 = vmul.f32 %v262_v38, %v188_v29 }
 0x2f4   :  { %v288_v41 = vsub.f32 %v284_v36, %v286_v37 }
 0x2f5   :  { %v287_v42 = vsub.f32 %v283_v39, %v285_v40 }
 0x2f6   :  { %v291_v43 = vsel %vm289_vm3, %v288_v41, 0.0 }
 0x2f7   :  { %v290_v44 = vsel %vm289_vm3, %v287_v42, 0.0 }
 0x2f8   :  { %v292_v45 = vadd.f32 %v291_v43, %v290_v44 }
 0x2fa   :  { %293 = vadd.xlane.f32.xlu1 %v292_v45 }
 0x387   :  { %v294_v46 = vpop.xlane.xlu1 %293 }
 0x388   :  { %v295_v47 = vrot.slane %v294_v46, 4 }
 0x38a   :  { %v296_v48 = vadd.f32 %v295_v47, %v294_v46 }
 0x38c   :  { %v297_v49 = vrot.slane %v296_v48, 2 }
 0x38e   :  { %v298_v50 = vadd.f32 %v297_v49, %v296_v48 }
 0x390   :  { %v299_v51 = vrot.slane %v298_v50, 1 }
 0x392   :  { %v300_v52 = vadd.f32 %v299_v51, %v298_v50 }
 0x394   :  { %353 = vpush %v300_v52 }
 0x3c5   :  { %s354_s7 = spop %353 }
 0x3c6   :  { %v302_v53 = vstv %s354_s7 }
 0x3c7   :  { %304 = vst.msk [vmem:[#allocation7] sm:$0x1] %vm303_vm4, %v302_v53 }
 0x3c8   :  { %424 = shalt.err (!%p421_p6)
}
 0x3c9   :  { %s425_s12 = scalar_lea.hbm %s507_s2, 16 }
 0x3ca   :  { %p426_p7 = scmp.ne.s32.totalorder %s507_s2, %s425_s12  ;;  %p429_p8 = scmp.lt.u32.totalorder %s425_s12, %s507_s2 }
 0x3cc   :  { %p431_p9 = pnand %p429_p8, %p426_p7 }
 0x3ce   :  { %434 = shalt.err (!%p431_p9)
}
 0x3cf   :  { %314 = dma.vmem_to_hbm [thread:$0]  %s312_s6, 16, %s507_s2, [#allocation4]  }
 0x3d0   :  { %439 = dma.done.wait [#allocation4], 16  }
 0x3d1   :  { %440 = vsyncadd [#allocation4], 4294967280 }
 0x3d2   :  { %318 = vsyncpa [#allocation3], 1 }
 0x3d3   :  { %319 = vsyncpa [#allocation6], 1 }
 0x3d4   :  { %320 = vsyncpa [#allocation4], 1 }

</bundles_post_ra>
